<compile_context>
chip_gen: v7x
topology: tpu7x:2x2x1
jax: 0.10.0
libtpu: 0.0.40
codegen_flags: <defaults>
</compile_context>

<pallas_src>
import functools

import jax
import jax.numpy as jnp
from jax import lax
from jax.experimental import pallas as pl
from jax.experimental.pallas import tpu as pltpu


def _layernorm_kernel(x_ref, w_ref, b_ref, o_ref, *, eps):
    # x_ref: (bm, D) block of rows; w_ref/b_ref: (1, D) VMEM-resident params.
    x = x_ref[...].astype(jnp.float32)
    mean = jnp.mean(x, axis=-1, keepdims=True)           # (bm, 1)
    xc = x - mean
    var = jnp.mean(xc * xc, axis=-1, keepdims=True)      # biased variance
    inv = lax.rsqrt(var + eps)                           # EUP rsqrt: free slot
    w = w_ref[...].astype(jnp.float32)
    b = b_ref[...].astype(jnp.float32)
    o_ref[...] = (xc * inv * w + b).astype(o_ref.dtype)


def _pick_bm(B, D, itemsize, budget_bytes=24 * 1024 * 1024):
    # Per-row VMEM estimate: x + out double-buffered in native dtype plus
    # ~3 f32 temporaries of the compute block.
    per_row = D * (4 * itemsize + 3 * 4)
    bm = max(1, min(B, budget_bytes // max(per_row, 1), 256))
    if bm >= B:
        return B                       # single block: block dim == array dim
    return max(8, (bm // 8) * 8)       # tiled: keep sublane-aligned


def mtgnn_layer_norm(x, weight, bias, idx, *, eps=1e-5, bm=None,
                     vmem_limit_bytes=64 * 1024 * 1024):
    """LayerNorm forward matching the MTGNN LayerNorm module.

    x      : (B, C, N_sel, T)
    weight : (C, N_total, T)   full affine scale over all nodes
    bias   : (C, N_total, T)   full affine shift over all nodes
    idx    : (N_sel,) int      node indices selecting columns of weight/bias
    returns: (B, C, N_sel, T)
    """
    B, C, N, T = x.shape
    D = C * N * T

    # Gather node-sliced affine params (tiny) in the wrapper, flatten to (1, D).
    # TODO(synk): the gather weight[:, idx, :] stays in plain JAX; it is a few
    # KiB of parameters and not worth an in-kernel DMA gather.
    w2d = weight[:, idx, :].reshape(1, D)
    b2d = bias[:, idx, :].reshape(1, D)

    # Contiguous reshape only — no transpose, no extra HBM round trip.
    x2d = x.reshape(B, D)

    if bm is None:
        bm = _pick_bm(B, D, jnp.dtype(x.dtype).itemsize)
    bm = max(1, min(bm, B))

    Bp = pl.cdiv(B, bm) * bm
    if Bp != B:
        # Padded rows normalize to the bias values (finite); sliced off below.
        x2d = jnp.pad(x2d, ((0, Bp - B), (0, 0)))

    out = pl.pallas_call(
        functools.partial(_layernorm_kernel, eps=eps),
        out_shape=jax.ShapeDtypeStruct((Bp, D), x.dtype),
        grid_spec=pl.GridSpec(
            grid=(Bp // bm,),
            in_specs=[
                pl.BlockSpec((bm, D), lambda i: (i, 0)),   # x rows
                pl.BlockSpec((1, D), lambda i: (0, 0)),    # weight, resident
                pl.BlockSpec((1, D), lambda i: (0, 0)),    # bias, resident
            ],
            out_specs=pl.BlockSpec((bm, D), lambda i: (i, 0)),
        ),
        compiler_params=pltpu.CompilerParams(
            dimension_semantics=("parallel",),
            vmem_limit_bytes=vmem_limit_bytes,
        ),
    )(x2d, w2d, b2d)

    return out[:B].reshape(B, C, N, T)


if __name__ == "__main__":
    key = jax.random.PRNGKey(0)
    k_x, k_w, k_b, k_idx = jax.random.split(key, 4)

    # Small shapes consistent with the module: (batch, channels, nodes, seq).
    B, C, T = 2, 4, 8
    N_total, N_sel = 20, 16
    eps = 1e-5

    x = jax.random.normal(k_x, (B, C, N_sel, T), dtype=jnp.float32)
    # The module initializes weight=1, bias=0; use perturbed params here so
    # the gather + affine path is actually exercised by the check.
    weight = 1.0 + 0.1 * jax.random.normal(k_w, (C, N_total, T), dtype=jnp.float32)
    bias = 0.1 * jax.random.normal(k_b, (C, N_total, T), dtype=jnp.float32)
    idx = jax.random.permutation(k_idx, N_total)[:N_sel]

    y = mtgnn_layer_norm(x, weight, bias, idx, eps=eps)
    y = jax.block_until_ready(y)

    # Pure-JAX reference of
    # F.layer_norm(x, x.shape[1:], weight[:, idx, :], bias[:, idx, :], eps).
    xf = x.reshape(B, -1).astype(jnp.float32)
    mean = jnp.mean(xf, axis=1, keepdims=True)
    var = jnp.mean((xf - mean) ** 2, axis=1, keepdims=True)
    xn = ((xf - mean) / jnp.sqrt(var + eps)).reshape(B, C, N_sel, T)
    y_ref = xn * weight[:, idx, :][None] + bias[:, idx, :][None]

    assert y.shape == (B, C, N_sel, T)
    assert jnp.allclose(y, y_ref, atol=1e-4, rtol=1e-4)

    print("KERNEL_OK")
</pallas_src>

<mosaic_0001>
module attributes {stable_mosaic.version = 11 : i64} {
  func.func @_layernorm_kernel(%arg0: i32, %arg1: memref<2x512xf32, #tpu.memory_space<vmem>>, %arg2: memref<1x512xf32, #tpu.memory_space<vmem>>, %arg3: memref<1x512xf32, #tpu.memory_space<vmem>>, %arg4: memref<2x512xf32, #tpu.memory_space<vmem>>) attributes {dimension_semantics = [#tpu.dimension_semantics<parallel>], iteration_bounds = array<i64: 1>, scalar_prefetch = 0 : i64, scratch_operands = 0 : i64, tpu.core_type = #tpu.core_type<tc>, window_params = [{transform_indices = @transform_0, window_bounds = array<i64: 2, 512>}, {pipeline_mode = #tpu.pipeline_mode<synchronous>, transform_indices = @transform_1, window_bounds = array<i64: 1, 512>}, {pipeline_mode = #tpu.pipeline_mode<synchronous>, transform_indices = @transform_2, window_bounds = array<i64: 1, 512>}, {transform_indices = @transform_3, window_bounds = array<i64: 2, 512>}]} {
    %c0 = arith.constant 0 : index
    %c0_0 = arith.constant 0 : index
    %0 = vector.load %arg1[%c0, %c0_0] : memref<2x512xf32, #tpu.memory_space<vmem>>, vector<2x512xf32>
    %cst = arith.constant dense<0.000000e+00> : vector<2xf32>
    %1 = vector.multi_reduction <add>, %0, %cst [1] : vector<2x512xf32> to vector<2xf32>
    %2 = vector.shape_cast %1 : vector<2xf32> to vector<2x1xf32>
    %cst_1 = arith.constant 5.120000e+02 : f32
    %3 = vector.broadcast %cst_1 : f32 to vector<2x1xf32>
    %4 = arith.divf %2, %3 : vector<2x1xf32>
    %5 = vector.broadcast %4 : vector<2x1xf32> to vector<2x512xf32>
    %6 = arith.subf %0, %5 : vector<2x512xf32>
    %7 = arith.mulf %6, %6 : vector<2x512xf32>
    %cst_2 = arith.constant dense<0.000000e+00> : vector<2xf32>
    %8 = vector.multi_reduction <add>, %7, %cst_2 [1] : vector<2x512xf32> to vector<2xf32>
    %9 = vector.shape_cast %8 : vector<2xf32> to vector<2x1xf32>
    %cst_3 = arith.constant 5.120000e+02 : f32
    %10 = vector.broadcast %cst_3 : f32 to vector<2x1xf32>
    %11 = arith.divf %9, %10 : vector<2x1xf32>
    %cst_4 = arith.constant 9.99999974E-6 : f32
    %12 = vector.broadcast %cst_4 : f32 to vector<2x1xf32>
    %13 = arith.addf %11, %12 : vector<2x1xf32>
    %14 = math.rsqrt %13 : vector<2x1xf32>
    %c0_5 = arith.constant 0 : index
    %c0_6 = arith.constant 0 : index
    %15 = vector.load %arg2[%c0_5, %c0_6] : memref<1x512xf32, #tpu.memory_space<vmem>>, vector<1x512xf32>
    %c0_7 = arith.constant 0 : index
    %c0_8 = arith.constant 0 : index
    %16 = vector.load %arg3[%c0_7, %c0_8] : memref<1x512xf32, #tpu.memory_space<vmem>>, vector<1x512xf32>
    %17 = vector.broadcast %14 : vector<2x1xf32> to vector<2x512xf32>
    %18 = arith.mulf %6, %17 : vector<2x512xf32>
    %19 = vector.broadcast %15 : vector<1x512xf32> to vector<2x512xf32>
    %20 = arith.mulf %18, %19 : vector<2x512xf32>
    %21 = vector.broadcast %16 : vector<1x512xf32> to vector<2x512xf32>
    %22 = arith.addf %20, %21 : vector<2x512xf32>
    %c0_9 = arith.constant 0 : index
    %c0_10 = arith.constant 0 : index
    %23 = vector.load %arg4[%c0_9, %c0_10] : memref<2x512xf32, #tpu.memory_space<vmem>>, vector<2x512xf32>
    tpu.vector_store %arg4[%c0_9, %c0_10], %22 {strides = array<i32>} : memref<2x512xf32, #tpu.memory_space<vmem>>, vector<2x512xf32>,
    return
  }
  func.func @transform_0(%arg0: i32) -> (i32, i32) {
    %c0_i32 = arith.constant 0 : i32
    %c0_i32_0 = arith.constant 0 : i32
    return %arg0, %c0_i32 : i32, i32
  }
  func.func @transform_1(%arg0: i32) -> (i32, i32) {
    %c0_i32 = arith.constant 0 : i32
    %c0_i32_0 = arith.constant 0 : i32
    %c0_i32_1 = arith.constant 0 : i32
    return %c0_i32, %c0_i32_0 : i32, i32
  }
  func.func @transform_2(%arg0: i32) -> (i32, i32) {
    %c0_i32 = arith.constant 0 : i32
    %c0_i32_0 = arith.constant 0 : i32
    %c0_i32_1 = arith.constant 0 : i32
    return %c0_i32, %c0_i32_0 : i32, i32
  }
  func.func @transform_3(%arg0: i32) -> (i32, i32) {
    %c0_i32 = arith.constant 0 : i32
    %c0_i32_0 = arith.constant 0 : i32
    return %arg0, %c0_i32 : i32, i32
  }
}

</mosaic_0001>

<bundles_post_ra>
// kernel: tpu_custom_call.1
= control target key start
LH: loop header
LB: loop body
LE: loop exit
PB: predicated region body
PF: predicated region fallthrough
CT: control target
= control target key end

     0   :  { %8 = vsyncpa [#allocation3], 0  ;;  %s426_s0 = inlined_call_operand.hbm [shape: f32[2,512], index: 0, kind: input, shape index: {}]   ;;  %s427_s1 = inlined_call_operand.hbm [shape: f32[1,512], index: 1, kind: input, shape index: {}]   ;;  %s428_s2 = inlined_call_operand.hbm [shape: f32[1,512], index: 2, kind: input, shape index: {}]   ;;  %s429_s3 = inlined_call_operand.hbm [shape: f32[2,512], index: 3, kind: output, shape index: {}]  }
   0x1   :  { %9 = vsyncpa [#allocation6], 0 }
   0x2   :  { %10 = vsyncpa [#allocation4], 0  ;;  %s334_s12 = smov [#allocation5]   ;;  %s335_s14 = smov [#allocation2]  }
   0x3   :  { %s27_s13 = sshll.u32 %s334_s12, 4  ;;  %s17_s15 = sshll.u32 %s335_s14, 4  ;;  %s28_s13 = int_to_ptr.vmem [resolvable:$true] %s27_s13  ;;  %s18_s15 = int_to_ptr.vmem [resolvable:$true] %s17_s15 }
   0x4   :  { %s240_s18 = scalar_lea.hbm %s427_s1, 64 }
   0x5   :  { %p241_p0 = scmp.ne.s32.totalorder %s427_s1, %s240_s18  ;;  %p244_p1 = scmp.lt.u32.totalorder %s240_s18, %s427_s1 }
   0x7   :  { %p246_p2 = pnand %p244_p1, %p241_p0 }
   0x9   :  { %249 = shalt.err (!%p246_p2)
}
   0xa   :  { %s250_s23 = scalar_lea.vmem %s28_s13, 64  ;;  %p255_p4 = scmp.lt.s32.totalorder %s28_s13, %s28_s13 }
   0xb   :  { %p251_p3 = scmp.ne.s32.totalorder %s28_s13, %s250_s23  ;;  %p256_p5 = scmp.lt.s32.totalorder %s250_s23, %s250_s23 }
   0xd   :  { %p257_p6 = por %p256_p5, %p255_p4 }
   0xf   :  { %p258_p7 = pnand %p257_p6, %p251_p3 }
  0x11   :  { %261 = shalt.err (!%p258_p7)
}
  0x12   :  { %30 = dma.hbm_to_vmem [thread:$0]  %s427_s1, 64, %s28_s13, [#allocation6]  }
  0x13   :  { %s262_s28 = scalar_lea.hbm %s426_s0, 128 }
  0x14   :  { %p263_p8 = scmp.ne.s32.totalorder %s426_s0, %s262_s28  ;;  %p266_p9 = scmp.lt.u32.totalorder %s262_s28, %s426_s0 }
  0x16   :  { %p268_p10 = pnand %p266_p9, %p263_p8 }
  0x18   :  { %271 = shalt.err (!%p268_p10)
}
  0x19   :  { %s272_s6 = scalar_lea.vmem %s18_s15, 128  ;;  %p277_p12 = scmp.lt.s32.totalorder %s18_s15, %s18_s15 }
  0x1a   :  { %p273_p11 = scmp.ne.s32.totalorder %s18_s15, %s272_s6  ;;  %p278_p13 = scmp.lt.s32.totalorder %s272_s6, %s272_s6 }
  0x1c   :  { %p279_p0 = por %p278_p13, %p277_p12 }
  0x1e   :  { %p280_p1 = pnand %p279_p0, %p273_p11 }
  0x20   :  { %283 = shalt.err (!%p280_p1)
}
  0x21   :  { %20 = dma.hbm_to_vmem [thread:$0]  %s426_s0, 128, %s18_s15, [#allocation3]  }
  0x22   :  { %s336_s8 = smov [#allocation7]   ;;  %s284_s12 = scalar_lea.hbm %s428_s2, 64 }
  0x23   :  { %s37_s9 = sshll.u32 %s336_s8, 4  ;;  %p285_p2 = scmp.ne.s32.totalorder %s428_s2, %s284_s12  ;;  %s38_s9 = int_to_ptr.vmem [resolvable:$true] %s37_s9 }
  0x24   :  { %p288_p3 = scmp.lt.u32.totalorder %s284_s12, %s428_s2 }
  0x26   :  { %p290_p4 = pnand %p288_p3, %p285_p2 }
  0x28   :  { %293 = shalt.err (!%p290_p4)
}
  0x29   :  { %s294_s18 = scalar_lea.vmem %s38_s9, 64  ;;  %p299_p6 = scmp.lt.s32.totalorder %s38_s9, %s38_s9 }
  0x2a   :  { %p295_p5 = scmp.ne.s32.totalorder %s38_s9, %s294_s18  ;;  %p300_p7 = scmp.lt.s32.totalorder %s294_s18, %s294_s18 }
  0x2c   :  { %p301_p8 = por %p300_p7, %p299_p6 }
  0x2e   :  { %p302_p9 = pnand %p301_p8, %p295_p5 }
  0x30   :  { %305 = shalt.err (!%p302_p9)
}
  0x31   :  { %40 = dma.hbm_to_vmem [thread:$0]  %s428_s2, 64, %s38_s9, [#allocation6]  }
  0x32   :  { %328 = dma.done.wait [#allocation3], 128  }
  0x33   :  { %329 = vsyncadd [#allocation3], 4294967168 }
  0x34   :  { %330 = dma.done.wait [#allocation6], 128  }
  0x35   :  { %331 = vsyncadd [#allocation6], 4294967168  ;;  %v56_v0 = vlaneseq  ;;  %v337_v1 = vmov 1983009808   ;;  %v50_v6 = vld [vmem:[#allocation2] sm:$0xff]  ;;  %vm73_vm0 = vcmask 1041408  }
  0x36   :  { %v54_v2 = vunpack.c.l.s4 %v337_v1  ;;  %v52_v7 = vcombine.high %v50_v6, %v50_v6  ;;  %v338_v19 = vmov 269488144   ;;  %v130_v46 = vld [vmem:[#allocation5] sm:$0xf]  ;;  %v131_v48 = vld [vmem:[#allocation7] sm:$0xf] }
  0x37   :  { %v57_v3 = vshrl.u32 %v56_v0, 7  ;;  %v87_v20 = vunpack.c.l.s4 %v338_v19  ;;  %s339_s2 = smov [#allocation8]  }
  0x38   :  { %v55_v4 = vunpack.c.0.s8 %v54_v2  ;;  %s221_s19 = sshll.u32 %s339_s2, 4  ;;  %s222_s19 = int_to_ptr.vmem [resolvable:$true] %s221_s19 }
  0x39   :  { %v88_v21 = vunpack.c.0.s8 %v87_v20  ;;  %v145_v41 = vsub.s32 0, %v57_v3  ;;  %v149_v42 = vsub.s32 1, %v57_v3  ;;  %v153_v43 = vsub.s32 2, %v57_v3  ;;  %s306_s20 = scalar_lea.vmem %s222_s19, 128  ;;  %p311_p11 = scmp.lt.s32.totalorder %s222_s19, %s222_s19 }
  0x3a   :  { %v396_v5 = vsub.s32 %v55_v4, %v57_v3  ;;  %v157_v44 = vsub.s32 3, %v57_v3  ;;  %p307_p10 = scmp.ne.s32.totalorder %s222_s19, %s306_s20  ;;  %p312_p12 = scmp.lt.s32.totalorder %s306_s20, %s306_s20 }
  0x3b   :  { %v91_v22 = vsub.s32 %v88_v21, %v57_v3  ;;  %v146_v49 = vrot.slane %v130_v46, %v145_v41  ;;  %v150_v50 = vrot.slane %v130_v46, %v149_v42  ;;  %v154_v51 = vrot.slane %v130_v46, %v153_v43 }
  0x3c   :  { %v59_v8 = vrot.slane %v50_v6, %v396_v5  ;;  %v66_v9 = vrot.slane %v52_v7, %v396_v5  ;;  %v158_v52 = vrot.slane %v130_v46, %v157_v44  ;;  %v182_v53 = vrot.slane %v131_v48, %v145_v41  ;;  %p313_p13 = por %p312_p12, %p311_p11 }
  0x3d   :  { %v186_v54 = vrot.slane %v131_v48, %v149_v42  ;;  %v190_v55 = vrot.slane %v131_v48, %v153_v43  ;;  %v194_v56 = vrot.slane %v131_v48, %v157_v44  ;;  %v159_v57 = vcombine.low %v146_v49, %v150_v50 }
  0x3e   :  { %v67_v10 = vcombine.high %v59_v8, %v59_v8  ;;  %v74_v11 = vsel %vm73_vm0, %v59_v8, 0.0  ;;  %v68_v12 = vcombine.high %v66_v9, %v66_v9  ;;  %v77_v14 = vsel %vm73_vm0, %v66_v9, 0.0  ;;  %p314_p0 = pnand %p313_p13, %p307_p10 }
  0x3f   :  { %v160_v58 = vcombine.low %v154_v51, %v158_v52  ;;  %v195_v59 = vcombine.low %v182_v53, %v186_v54  ;;  %v196_v60 = vcombine.low %v190_v55, %v194_v56  ;;  %v167_v61 = vrot.slane %v159_v57, %v396_v5 }
  0x40   :  { %v75_v13 = vsel %vm73_vm0, %v67_v10, 0.0  ;;  %v79_v16 = vsel %vm73_vm0, %v68_v12, 0.0 }
  0x41   :  { %v76_v15 = vadd.f32 %v75_v13, %v74_v11  ;;  %v174_v62 = vrot.slane %v160_v58, %v396_v5  ;;  %v203_v63 = vrot.slane %v195_v59, %v396_v5  ;;  %v210_v0 = vrot.slane %v196_v60, %v396_v5 }
  0x43   :  { %v78_v17 = vadd.f32 %v77_v14, %v76_v15  ;;  %v175_v3 = vcombine.low %v167_v61, %v174_v62 }
  0x45   :  { %v80_v18 = vadd.f32 %v79_v16, %v78_v17 }
  0x47   :  { %81 = vadd.xlane.f32.xlu0 %v80_v18 }
  0xd4   :  { %v82_v23 = vpop.xlane.xlu0 %81 }
  0xd5   :  { %v84_v24 = vmul.f32 0.001953125, %v82_v23 }
  0xd7   :  { %v92_v25 = vrot.slane %v84_v24, %v91_v22 }
  0xd9   :  { %v94_v26 = vsub.f32 %v50_v6, %v92_v25  ;;  %v211_v6 = vcombine.low %v203_v63, %v210_v0 }
  0xdb   :  { %v95_v27 = vmul.f32 %v94_v26, %v94_v26 }
  0xdd   :  { %v97_v28 = vcombine.high %v95_v27, %v95_v27  ;;  %v104_v29 = vrot.slane %v95_v27, %v396_v5 }
  0xdf   :  { %v111_v30 = vrot.slane %v97_v28, %v396_v5  ;;  %v112_v31 = vcombine.high %v104_v29, %v104_v29  ;;  %v118_v33 = vsel %vm73_vm0, %v104_v29, 0.0 }
  0xe1   :  { %v113_v32 = vcombine.high %v111_v30, %v111_v30  ;;  %v119_v34 = vsel %vm73_vm0, %v112_v31, 0.0  ;;  %v121_v36 = vsel %vm73_vm0, %v111_v30, 0.0 }
  0xe2   :  { %v120_v35 = vadd.f32 %v119_v34, %v118_v33 }
  0xe3   :  { %v123_v38 = vsel %vm73_vm0, %v113_v32, 0.0 }
  0xe4   :  { %v122_v37 = vadd.f32 %v121_v36, %v120_v35 }
  0xe6   :  { %v124_v39 = vadd.f32 %v123_v38, %v122_v37 }
  0xe8   :  { %125 = vadd.xlane.f32.xlu0 %v124_v39 }
 0x175   :  { %v126_v40 = vpop.xlane.xlu0 %125 }
 0x176   :  { %v127_v45 = vmul.f32 0.001953125, %v126_v40 }
 0x178   :  { %v128_v47 = vadd.f32 1e-05, %v127_v45 }
 0x17a   :  { %238 = vrsqrt.f32 %v128_v47 }
 0x184   :  { %v239_v1 = vpop.eup %238 }
 0x185   :  { %v139_v2 = vrot.slane %v239_v1, %v91_v22 }
 0x187   :  { %v141_v4 = vmul.f32 %v139_v2, %v94_v26 }
 0x189   :  { %v177_v7 = vmul.f32 %v175_v3, %v141_v4 }
 0x18b   :  { %v213_v8 = vadd.f32 %v211_v6, %v177_v7 }
 0x18d   :  { %214 = vst [vmem:[#allocation8] sm:$0xff] %v213_v8 }
 0x18e   :  { %317 = shalt.err (!%p314_p0)
}
 0x18f   :  { %s318_s23 = scalar_lea.hbm %s429_s3, 128 }
 0x190   :  { %p319_p1 = scmp.ne.s32.totalorder %s429_s3, %s318_s23  ;;  %p322_p2 = scmp.lt.u32.totalorder %s318_s23, %s429_s3 }
 0x192   :  { %p324_p3 = pnand %p322_p2, %p319_p1 }
 0x194   :  { %327 = shalt.err (!%p324_p3)
}
 0x195   :  { %224 = dma.vmem_to_hbm [thread:$0]  %s222_s19, 128, %s429_s3, [#allocation4]  }
 0x196   :  { %332 = dma.done.wait [#allocation4], 128  }
 0x197   :  { %333 = vsyncadd [#allocation4], 4294967168 }
 0x198   :  { %228 = vsyncpa [#allocation3], 1 }
 0x199   :  { %229 = vsyncpa [#allocation6], 1 }
 0x19a   :  { %230 = vsyncpa [#allocation4], 1 }

</bundles_post_ra>
